<compile_context>
chip_gen: v6e
topology: v6e:2x2x1
jax: 0.10.0
libtpu: 0.0.40
codegen_flags: <defaults>
</compile_context>

<pallas_src>
import functools

import numpy as np
import jax
import jax.numpy as jnp
from jax import lax
from jax.experimental import pallas as pl
from jax.experimental.pallas import tpu as pltpu

K = 3       # conv kernel size
PAD = 1     # 'same' padding (stride must be 1 so new_state matches prev_state)


def _convgru_kernel(H, WC, xh_ref, hin_ref, w1_ref, b1_ref, w2_ref, out_ref):
    """One batch-block.
      xh_ref : (BH, K*W*(Cin+Cout)) bf16 — pre-windowed cat(x, h), rows image-major.
      hin_ref: (BH, W*Cout) f32        — interior hidden state (lane-dense).
      w1_ref : fused banded weights [update | reset | out_gate_x] (bf16).
      w2_ref : banded out-gate h-part weights (bf16).
      out_ref: (BH, W*Cout) f32        — new hidden state.
    """
    BH = hin_ref.shape[0]

    # One fused MXU matmul -> update | reset | out-gate-x (all 128-lane-aligned columns).
    g = jnp.dot(xh_ref[...], w1_ref[...],
                preferred_element_type=jnp.float32) + b1_ref[...]
    z = jax.nn.sigmoid(g[:, :WC])              # update gate
    r = jax.nn.sigmoid(g[:, WC:2 * WC])        # reset gate
    o_x = g[:, 2 * WC:]                        # out-gate x contribution (+ bias)

    h_in = hin_ref[...]                        # (BH, W*Cout) f32
    hr = h_in * r

    # Vertical (kh) windows of h*r.  The interior banded weights already account for the
    # horizontal zero padding, so only row shifts are needed; rows at image boundaries
    # inside the batch block are zeroed with an iota mask (H rows per image).
    row = lax.broadcasted_iota(jnp.int32, (BH, WC), 0) % H
    zrow = jnp.zeros((PAD, WC), jnp.float32)
    hr_dn = jnp.concatenate([zrow, hr[:BH - PAD, :]], axis=0)    # row i <- h*r[i-1]
    hr_up = jnp.concatenate([hr[PAD:, :], zrow], axis=0)         # row i <- h*r[i+1]
    hr_dn = jnp.where(row == 0, 0.0, hr_dn)
    hr_up = jnp.where(row == H - 1, 0.0, hr_up)
    hr_win = jnp.concatenate([hr_dn, hr, hr_up],
                             axis=1).astype(w2_ref.dtype)        # (BH, K*W*Cout)

    o = o_x + jnp.dot(hr_win, w2_ref[...], preferred_element_type=jnp.float32)
    o = jnp.where(o >= 0, o, 0.2 * o)          # leaky_relu, negative_slope=0.2

    # new_h = h*z + o*(1-z)  ==  o + z*(h - o)   (one fewer multiply)
    out_ref[...] = (o + z * (h_in - o)).astype(out_ref.dtype)


# ------------------------- host-side weight packing --------------------------

def _banded_interior(w_hwio, Wdim):
    """Expand a (K, K, Ci, Co) HWIO conv weight into a banded matrix (K*W*Ci, W*Co) such
    that [K row-shifted windows of the row-padded-only input] @ banded == SAME-conv
    output laid out lane-dense as (H, W*Co).  Taps that fall on the horizontal zero
    padding are dropped (they contribute exactly zero).  Host-side, one-time packing."""
    w = np.asarray(w_hwio, np.float32)
    Kh, Kw, Ci, Co = w.shape
    band = np.zeros((Kh, Wdim, Ci, Wdim, Co), np.float32)
    for kw in range(Kw):
        for j in range(Wdim):
            ji = j + kw - PAD
            if 0 <= ji < Wdim:
                band[:, ji, :, j, :] = w[:, kw]
    return band.reshape(Kh * Wdim * Ci, Wdim * Co)


def _pack_weights(params, Cin, Cout, W):
    """Pack the 3 gate convs into two bf16 banded matrices + one f32 bias row.
    NOTE: uses NumPy on concrete params — call outside jax.jit (load-time packing)."""
    (wz, bz), (wr, br), (wo, bo) = params['update'], params['reset'], params['out']

    def split(w):
        w = np.asarray(w, np.float32)
        return w[:, :, :Cin, :], w[:, :, Cin:, :]

    wz_x, wz_h = split(wz)
    wr_x, wr_h = split(wr)
    wo_x, wo_h = split(wo)

    Dx, Dh, WC = K * W * Cin, K * W * Cout, W * Cout
    w1 = np.zeros((Dx + Dh, 3 * WC), np.float32)
    w1[:Dx, 0 * WC:1 * WC] = _banded_interior(wz_x, W)
    w1[Dx:, 0 * WC:1 * WC] = _banded_interior(wz_h, W)
    w1[:Dx, 1 * WC:2 * WC] = _banded_interior(wr_x, W)
    w1[Dx:, 1 * WC:2 * WC] = _banded_interior(wr_h, W)
    w1[:Dx, 2 * WC:3 * WC] = _banded_interior(wo_x, W)   # h-block stays zero: o_x only
    w2 = _banded_interior(wo_h, W)                        # (Dh, WC)

    b1 = np.concatenate([np.tile(np.asarray(bz, np.float32), W),
                         np.tile(np.asarray(br, np.float32), W),
                         np.tile(np.asarray(bo, np.float32), W)])[None, :]
    return (jnp.asarray(w1, jnp.bfloat16),
            jnp.asarray(b1, jnp.float32),
            jnp.asarray(w2, jnp.bfloat16))


# --------------------------------- wrapper -----------------------------------

def _pick_block_b(B, H, target_rows=256):
    """Largest divisor of B whose block gives ~target_rows MXU rows (256-wide v6e/v7x)."""
    cap = max(1, min(B, -(-target_rows // H)))
    bb = cap
    while B % bb:
        bb -= 1
    return bb


def convgru_cell_forward(x_nchw, h_nchw, params):
    """ConvGRU cell forward. x: (B, Cin, H, W); h: (B, Cout, H, W) (prev_state; pass
    zeros to reproduce the prev_state=None path). Returns new_state (B, Cout, H, W)."""
    B, Cin, H, W = x_nchw.shape
    Cout = h_nchw.shape[1]
    WC = W * Cout                      # lane-dense stores when WC % 128 == 0 (128 here)
    Dx, Dh = K * W * Cin, K * W * Cout

    # ---- glue (outside the kernel): NCHW -> pre-windowed lane-dense operands ----
    def windows(a_nchw, C):
        a = jnp.transpose(a_nchw, (0, 2, 3, 1)).astype(jnp.float32)   # (B,H,W,C)
        a = jnp.pad(a, ((0, 0), (PAD, PAD), (0, 0), (0, 0)))          # rows only
        af = a.reshape(B, H + 2 * PAD, W * C)
        win = jnp.concatenate([af[:, kh:kh + H, :] for kh in range(K)], axis=-1)
        return win.reshape(B * H, K * W * C)

    x_win = windows(x_nchw, Cin)                                      # (B*H, Dx)
    h_win = windows(h_nchw, Cout)                                     # (B*H, Dh)
    xh_win = jnp.concatenate([x_win, h_win], axis=-1).astype(jnp.bfloat16)
    h_in = jnp.transpose(h_nchw, (0, 2, 3, 1)).astype(jnp.float32).reshape(B * H, WC)

    w1, b1, w2 = _pack_weights(params, Cin, Cout, W)                  # load-time packing

    block_b = _pick_block_b(B, H)
    BHblk = block_b * H
    grid = (B // block_b,)

    kernel = functools.partial(_convgru_kernel, H, WC)

    out = pl.pallas_call(
        kernel,
        out_shape=jax.ShapeDtypeStruct((B * H, WC), jnp.float32),
        grid_spec=pltpu.PrefetchScalarGridSpec(
            num_scalar_prefetch=0,
            grid=grid,
            in_specs=[
                pl.BlockSpec((BHblk, Dx + Dh), lambda i: (i, 0)),
                pl.BlockSpec((BHblk, WC), lambda i: (i, 0)),
                pl.BlockSpec(w1.shape, lambda i: (0, 0)),   # constant index: fetched once
                pl.BlockSpec(b1.shape, lambda i: (0, 0)),
                pl.BlockSpec(w2.shape, lambda i: (0, 0)),
            ],
            out_specs=pl.BlockSpec((BHblk, WC), lambda i: (i, 0)),
        ),
        compiler_params=pltpu.CompilerParams(
            dimension_semantics=("parallel",)),
    )(xh_win, h_in, w1, b1, w2)

    # (B*H, W*Cout) -> NCHW
    return jnp.transpose(out.reshape(B, H, W, Cout), (0, 3, 1, 2))


# ---------------- pure-JAX reference (for correctness check) ----------------

def _conv_same_ref(x, w, b):
    y = lax.conv_general_dilated(x, w, (1, 1), 'SAME',
                                 dimension_numbers=('NHWC', 'HWIO', 'NHWC'))
    return y + b


def reference_forward(x_nchw, h_nchw, params):
    x = jnp.transpose(x_nchw, (0, 2, 3, 1)).astype(jnp.float32)
    h = jnp.transpose(h_nchw, (0, 2, 3, 1)).astype(jnp.float32)
    (wz, bz), (wr, br), (wo, bo) = params['update'], params['reset'], params['out']
    stacked = jnp.concatenate([x, h], axis=-1)
    z = jax.nn.sigmoid(_conv_same_ref(stacked, wz, bz))
    r = jax.nn.sigmoid(_conv_same_ref(stacked, wr, br))
    o_pre = _conv_same_ref(jnp.concatenate([x, h * r], axis=-1), wo, bo)
    o = jnp.where(o_pre >= 0, o_pre, 0.2 * o_pre)
    new_h = h * z + o * (1.0 - z)
    return jnp.transpose(new_h, (0, 3, 1, 2))


# ---------------------------------- main ------------------------------------

if __name__ == "__main__":
    B, Cin, Cout, Hdim, Wdim = 2, 4, 8, 16, 16

    key = jax.random.PRNGKey(0)
    keys = jax.random.split(key, 8)

    def make_gate(kw, kb):
        # Conv2d(channel_input + channel_output, channel_output, kernel=3) in HWIO
        w = 0.1 * jax.random.normal(kw, (K, K, Cin + Cout, Cout), jnp.float32)
        b = 0.05 * jax.random.normal(kb, (Cout,), jnp.float32)
        return w, b

    params = {
        'update': make_gate(keys[0], keys[1]),
        'reset': make_gate(keys[2], keys[3]),
        'out': make_gate(keys[4], keys[5]),
    }

    x = jax.random.normal(keys[6], (B, Cin, Hdim, Wdim), jnp.float32)
    prev_state = jax.random.normal(keys[7], (B, Cout, Hdim, Wdim), jnp.float32)

    new_state = convgru_cell_forward(x, prev_state, params)
    new_state = jax.block_until_ready(new_state)

    ref = jax.block_until_ready(reference_forward(x, prev_state, params))
    assert new_state.shape == (B, Cout, Hdim, Wdim)
    # bf16 matmul operands (f32 accumulation) -> relaxed tolerance vs the f32 reference.
    assert jnp.allclose(new_state, ref, atol=5e-2, rtol=5e-2), "mismatch vs reference"

    print("KERNEL_OK")
</pallas_src>

<mosaic_0001>
module attributes {stable_mosaic.version = 11 : i64} {
  func.func @_convgru_kernel(%arg0: i32, %arg1: memref<32x576xbf16, #tpu.memory_space<vmem>>, %arg2: memref<32x128xf32, #tpu.memory_space<vmem>>, %arg3: memref<576x384xbf16, #tpu.memory_space<vmem>>, %arg4: memref<1x384xf32, #tpu.memory_space<vmem>>, %arg5: memref<384x128xbf16, #tpu.memory_space<vmem>>, %arg6: memref<32x128xf32, #tpu.memory_space<vmem>>) attributes {dimension_semantics = [#tpu.dimension_semantics<parallel>], iteration_bounds = array<i64: 1>, scalar_prefetch = 0 : i64, scratch_operands = 0 : i64, tpu.core_type = #tpu.core_type<tc>, window_params = [{transform_indices = @transform_0, window_bounds = array<i64: 32, 576>}, {transform_indices = @transform_1, window_bounds = array<i64: 32, 128>}, {pipeline_mode = #tpu.pipeline_mode<synchronous>, transform_indices = @transform_2, window_bounds = array<i64: 576, 384>}, {pipeline_mode = #tpu.pipeline_mode<synchronous>, transform_indices = @transform_3, window_bounds = array<i64: 1, 384>}, {pipeline_mode = #tpu.pipeline_mode<synchronous>, transform_indices = @transform_4, window_bounds = array<i64: 384, 128>}, {transform_indices = @transform_5, window_bounds = array<i64: 32, 128>}]} {
    %c0 = arith.constant 0 : index
    %c0_0 = arith.constant 0 : index
    %0 = vector.load %arg1[%c0, %c0_0] : memref<32x576xbf16, #tpu.memory_space<vmem>>, vector<32x576xbf16>
    %c0_1 = arith.constant 0 : index
    %c0_2 = arith.constant 0 : index
    %1 = vector.load %arg3[%c0_1, %c0_2] : memref<576x384xbf16, #tpu.memory_space<vmem>>, vector<576x384xbf16>
    %cst = arith.constant dense<0.000000e+00> : vector<32x384xf32>
    %2 = tpu.matmul %0, %1, %cst {dimension_numbers = #tpu.dot_dimension_numbers<[1], [0], [0], [1], [0, 0, 1, 1], [], []>} : vector<32x576xbf16>, vector<576x384xbf16>, vector<32x384xf32> -> vector<32x384xf32>
    %c0_3 = arith.constant 0 : index
    %c0_4 = arith.constant 0 : index
    %3 = vector.load %arg4[%c0_3, %c0_4] : memref<1x384xf32, #tpu.memory_space<vmem>>, vector<1x384xf32>
    %4 = vector.broadcast %3 : vector<1x384xf32> to vector<32x384xf32>
    %5 = arith.addf %2, %4 : vector<32x384xf32>
    %6 = vector.extract_strided_slice %5 {offsets = [0, 0], sizes = [32, 128], strides = [1, 1]} : vector<32x384xf32> to vector<32x128xf32>
    %7 = arith.negf %6 : vector<32x128xf32>
    %8 = math.exp %7 : vector<32x128xf32>
    %cst_5 = arith.constant 1.000000e+00 : f32
    %9 = vector.broadcast %cst_5 : f32 to vector<32x128xf32>
    %10 = arith.addf %9, %8 : vector<32x128xf32>
    %11 = arith.divf %9, %10 : vector<32x128xf32>
    %12 = vector.extract_strided_slice %5 {offsets = [0, 128], sizes = [32, 128], strides = [1, 1]} : vector<32x384xf32> to vector<32x128xf32>
    %13 = arith.negf %12 : vector<32x128xf32>
    %14 = math.exp %13 : vector<32x128xf32>
    %cst_6 = arith.constant 1.000000e+00 : f32
    %15 = vector.broadcast %cst_6 : f32 to vector<32x128xf32>
    %16 = arith.addf %15, %14 : vector<32x128xf32>
    %17 = arith.divf %15, %16 : vector<32x128xf32>
    %18 = vector.extract_strided_slice %5 {offsets = [0, 256], sizes = [32, 128], strides = [1, 1]} : vector<32x384xf32> to vector<32x128xf32>
    %c0_7 = arith.constant 0 : index
    %c0_8 = arith.constant 0 : index
    %19 = vector.load %arg2[%c0_7, %c0_8] : memref<32x128xf32, #tpu.memory_space<vmem>>, vector<32x128xf32>
    %20 = arith.mulf %19, %17 : vector<32x128xf32>
    %21 = tpu.iota {dimensions = array<i32: 0>} : vector<32x128xi32>
    %c16_i32 = arith.constant 16 : i32
    %c0_i32 = arith.constant 0 : i32
    %22 = arith.cmpi eq, %c16_i32, %c0_i32 : i32
    %c1_i32 = arith.constant 1 : i32
    %23 = arith.select %22, %c1_i32, %c16_i32 : i32
    %24 = vector.broadcast %23 : i32 to vector<32x128xi32>
    %25 = arith.remsi %21, %24 : vector<32x128xi32>
    %c0_i32_9 = arith.constant 0 : i32
    %26 = vector.broadcast %c0_i32_9 : i32 to vector<32x128xi32>
    %27 = arith.cmpi ne, %25, %26 : vector<32x128xi32>
    %c0_i32_10 = arith.constant 0 : i32
    %28 = vector.broadcast %c0_i32_10 : i32 to vector<32x128xi32>
    %29 = arith.cmpi slt, %25, %28 : vector<32x128xi32>
    %c0_i32_11 = arith.constant 0 : i32
    %30 = arith.cmpi slt, %23, %c0_i32_11 : i32
    %31 = vector.broadcast %30 : i1 to vector<32x128xi1>
    %32 = vector.broadcast %31 : vector<32x128xi1> to vector<32x128xi1>
    %33 = arith.xori %29, %32 : vector<32x128xi1>
    %34 = arith.andi %33, %27 : vector<32x128xi1>
    %35 = vector.broadcast %23 : i32 to vector<32x128xi32>
    %36 = arith.addi %25, %35 : vector<32x128xi32>
    %37 = arith.select %34, %36, %25 : vector<32x128xi1>, vector<32x128xi32>
    %cst_12 = arith.constant 0.000000e+00 : f32
    %38 = vector.broadcast %cst_12 : f32 to vector<1x128xf32>
    %39 = vector.extract_strided_slice %20 {offsets = [0, 0], sizes = [31, 128], strides = [1, 1]} : vector<32x128xf32> to vector<31x128xf32>
    %40 = tpu.concatenate %38, %39 in 0 : vector<1x128xf32>, vector<31x128xf32> -> vector<32x128xf32>
    %41 = vector.extract_strided_slice %20 {offsets = [1, 0], sizes = [31, 128], strides = [1, 1]} : vector<32x128xf32> to vector<31x128xf32>
    %42 = tpu.concatenate %41, %38 in 0 : vector<31x128xf32>, vector<1x128xf32> -> vector<32x128xf32>
    %c0_i32_13 = arith.constant 0 : i32
    %43 = vector.broadcast %c0_i32_13 : i32 to vector<32x128xi32>
    %44 = arith.cmpi eq, %37, %43 : vector<32x128xi32>
    %cst_14 = arith.constant 0.000000e+00 : f32
    %45 = vector.broadcast %cst_14 : f32 to vector<32x128xf32>
    %46 = arith.select %44, %45, %40 : vector<32x128xi1>, vector<32x128xf32>
    %c15_i32 = arith.constant 15 : i32
    %47 = vector.broadcast %c15_i32 : i32 to vector<32x128xi32>
    %48 = arith.cmpi eq, %37, %47 : vector<32x128xi32>
    %cst_15 = arith.constant 0.000000e+00 : f32
    %49 = vector.broadcast %cst_15 : f32 to vector<32x128xf32>
    %50 = arith.select %48, %49, %42 : vector<32x128xi1>, vector<32x128xf32>
    %51 = tpu.concatenate %46, %20, %50 in 1 : vector<32x128xf32>, vector<32x128xf32>, vector<32x128xf32> -> vector<32x384xf32>
    %52 = arith.truncf %51 : vector<32x384xf32> to vector<32x384xbf16>
    %c0_16 = arith.constant 0 : index
    %c0_17 = arith.constant 0 : index
    %53 = vector.load %arg5[%c0_16, %c0_17] : memref<384x128xbf16, #tpu.memory_space<vmem>>, vector<384x128xbf16>
    %cst_18 = arith.constant dense<0.000000e+00> : vector<32x128xf32>
    %54 = tpu.matmul %52, %53, %cst_18 {dimension_numbers = #tpu.dot_dimension_numbers<[1], [0], [0], [1], [0, 0, 1, 1], [], []>} : vector<32x384xbf16>, vector<384x128xbf16>, vector<32x128xf32> -> vector<32x128xf32>
    %55 = arith.addf %18, %54 : vector<32x128xf32>
    %cst_19 = arith.constant 0.000000e+00 : f32
    %56 = vector.broadcast %cst_19 : f32 to vector<32x128xf32>
    %57 = arith.cmpf oge, %55, %56 : vector<32x128xf32>
    %cst_20 = arith.constant 2.000000e-01 : f32
    %58 = vector.broadcast %cst_20 : f32 to vector<32x128xf32>
    %59 = arith.mulf %58, %55 : vector<32x128xf32>
    %60 = arith.select %57, %55, %59 : vector<32x128xi1>, vector<32x128xf32>
    %61 = arith.subf %19, %60 : vector<32x128xf32>
    %62 = arith.mulf %11, %61 : vector<32x128xf32>
    %63 = arith.addf %60, %62 : vector<32x128xf32>
    %c0_21 = arith.constant 0 : index
    %c0_22 = arith.constant 0 : index
    %64 = vector.load %arg6[%c0_21, %c0_22] : memref<32x128xf32, #tpu.memory_space<vmem>>, vector<32x128xf32>
    tpu.vector_store %arg6[%c0_21, %c0_22], %63 {strides = array<i32>} : memref<32x128xf32, #tpu.memory_space<vmem>>, vector<32x128xf32>,
    return
  }
  func.func @transform_0(%arg0: i32) -> (i32, i32) {
    %c0_i32 = arith.constant 0 : i32
    %c0_i32_0 = arith.constant 0 : i32
    return %arg0, %c0_i32 : i32, i32
  }
  func.func @transform_1(%arg0: i32) -> (i32, i32) {
    %c0_i32 = arith.constant 0 : i32
    %c0_i32_0 = arith.constant 0 : i32
    return %arg0, %c0_i32 : i32, i32
  }
  func.func @transform_2(%arg0: i32) -> (i32, i32) {
    %c0_i32 = arith.constant 0 : i32
    %c0_i32_0 = arith.constant 0 : i32
    %c0_i32_1 = arith.constant 0 : i32
    return %c0_i32, %c0_i32_0 : i32, i32
  }
  func.func @transform_3(%arg0: i32) -> (i32, i32) {
    %c0_i32 = arith.constant 0 : i32
    %c0_i32_0 = arith.constant 0 : i32
    %c0_i32_1 = arith.constant 0 : i32
    return %c0_i32, %c0_i32_0 : i32, i32
  }
  func.func @transform_4(%arg0: i32) -> (i32, i32) {
    %c0_i32 = arith.constant 0 : i32
    %c0_i32_0 = arith.constant 0 : i32
    %c0_i32_1 = arith.constant 0 : i32
    return %c0_i32, %c0_i32_0 : i32, i32
  }
  func.func @transform_5(%arg0: i32) -> (i32, i32) {
    %c0_i32 = arith.constant 0 : i32
    %c0_i32_0 = arith.constant 0 : i32
    return %arg0, %c0_i32 : i32, i32
  }
}

</mosaic_0001>

<bundles_post_ra>
// kernel: tpu_custom_call.1
= control target key start
LH: loop header
LB: loop body
LE: loop exit
PB: predicated region body
PF: predicated region fallthrough
CT: control target
= control target key end

     0   :  { %10 = vsyncpa [#allocation3], 0  ;;  %s2497_s0 = inlined_call_operand.hbm [shape: bf16[32,576], index: 0, kind: input, shape index: {}]   ;;  %s2498_s1 = inlined_call_operand.hbm [shape: f32[32,128], index: 1, kind: input, shape index: {}]   ;;  %s2499_s2 = inlined_call_operand.hbm [shape: bf16[576,384], index: 2, kind: input, shape index: {}]   ;;  %s2500_s3 = inlined_call_operand.vmem [shape: f32[1,384], index: 3, kind: input, shape index: {}]   ;;  %s2501_s4 = inlined_call_operand.hbm [shape: bf16[384,128], index: 4, kind: input, shape index: {}]   ;;  %s2502_s5 = inlined_call_operand.hbm [shape: f32[32,128], index: 5, kind: output, shape index: {}]  }
   0x1   :  { %11 = vsyncpa [#allocation6], 0 }
   0x2   :  { %12 = vsyncpa [#allocation9], 0 }
   0x3   :  { %13 = vsyncpa [#allocation4], 0  ;;  %s2334_s18 = smov [#allocation5]  }
   0x4   :  { %s31_s19 = sshll.u32 %s2334_s18, 4  ;;  %s32_s19 = int_to_ptr.vmem [resolvable:$true] %s31_s19 }
   0x5   :  { %s2234_s20 = scalar_lea.vmem %s32_s19, 512  ;;  %p2239_p1 = scmp.lt.s32.totalorder %s32_s19, %s32_s19 }
   0x6   :  { %p2235_p0 = scmp.ne.s32.totalorder %s32_s19, %s2234_s20  ;;  %p2240_p2 = scmp.lt.s32.totalorder %s2234_s20, %s2234_s20 }
   0x8   :  { %p2241_p3 = por %p2240_p2, %p2239_p1 }
   0xa   :  { %p2242_p4 = pnand %p2241_p3, %p2235_p0 }
   0xc   :  { %2245 = shalt.err (!%p2242_p4)
}
   0xd   :  { %s2335_s21 = smov 128   ;;  %s2336_s22 = smov 8  }
   0xe   :  { %37 = dma.hbm_to_vmem [thread:$0]  %s2498_s1, 512, %s32_s19, [#allocation6], %s2335_s21, %s2335_s21, %s2336_s22  }
   0xf   :  { %s2337_s25 = smov [#allocation2]  }
  0x10   :  { %s19_s26 = sshll.u32 %s2337_s25, 4  ;;  %s20_s26 = int_to_ptr.vmem [resolvable:$true] %s19_s26 }
  0x11   :  { %s2254_s27 = scalar_lea.vmem %s20_s26, 1280  ;;  %p2259_p6 = scmp.lt.s32.totalorder %s20_s26, %s20_s26 }
  0x12   :  { %p2255_p5 = scmp.ne.s32.totalorder %s20_s26, %s2254_s27  ;;  %p2260_p7 = scmp.lt.s32.totalorder %s2254_s27, %s2254_s27 }
  0x14   :  { %p2261_p8 = por %p2260_p7, %p2259_p6 }
  0x16   :  { %p2262_p9 = pnand %p2261_p8, %p2255_p5 }
  0x18   :  { %2265 = shalt.err (!%p2262_p9)
}
  0x19   :  { %s2338_s28 = smov 320   ;;  %s2339_s29 = smov 20  }
  0x1a   :  { %25 = dma.hbm_to_vmem [thread:$0]  %s2497_s0, 1280, %s20_s26, [#allocation3], %s2338_s28, %s2338_s28, %s2339_s29  }
  0x1b   :  { %s2340_s7 = smov [#allocation7]  }
  0x1c   :  { %s43_s8 = sshll.u32 %s2340_s7, 4  ;;  %s44_s8 = int_to_ptr.vmem [resolvable:$true] %s43_s8 }
  0x1d   :  { %s2274_s1 = scalar_lea.vmem %s44_s8, 13824  ;;  %p2279_p11 = scmp.lt.s32.totalorder %s44_s8, %s44_s8 }
  0x1e   :  { %p2275_p10 = scmp.ne.s32.totalorder %s44_s8, %s2274_s1  ;;  %p2280_p12 = scmp.lt.s32.totalorder %s2274_s1, %s2274_s1 }
  0x20   :  { %p2281_p13 = por %p2280_p12, %p2279_p11 }
  0x22   :  { %p2282_p0 = pnand %p2281_p13, %p2275_p10 }
  0x24   :  { %2285 = shalt.err (!%p2282_p0)
}
  0x25   :  { %s2341_s9 = smov 192   ;;  %s2342_s10 = smov 12  }
  0x26   :  { %49 = dma.hbm_to_vmem [thread:$0]  %s2499_s2, 13824, %s44_s8, [#allocation6], %s2341_s9, %s2341_s9, %s2342_s10  }
  0x27   :  { %s2343_s13 = smov [#allocation8]  }
  0x28   :  { %s57_s14 = sshll.u32 %s2343_s13, 4  ;;  %s58_s14 = int_to_ptr.vmem [resolvable:$true] %s57_s14 }
  0x29   :  { %s2294_s0 = scalar_lea.vmem %s58_s14, 3072  ;;  %p2299_p2 = scmp.lt.s32.totalorder %s58_s14, %s58_s14 }
  0x2a   :  { %p2295_p1 = scmp.ne.s32.totalorder %s58_s14, %s2294_s0  ;;  %p2300_p3 = scmp.lt.s32.totalorder %s2294_s0, %s2294_s0 }
  0x2c   :  { %p2301_p4 = por %p2300_p3, %p2299_p2 }
  0x2e   :  { %p2302_p5 = pnand %p2301_p4, %p2295_p1 }
  0x30   :  { %2305 = shalt.err (!%p2302_p5)
}
  0x31   :  { %s2344_s15 = smov 64   ;;  %s2345_s16 = smov 4  }
  0x32   :  { %63 = dma.hbm_to_vmem [thread:$0]  %s2501_s4, 3072, %s58_s14, [#allocation9], %s2344_s15, %s2344_s15, %s2345_s16  }
  0x33   :  { %2326 = dma.done.wait [#allocation3], 1280  }
  0x34   :  { %2327 = vsyncadd [#allocation3], 4294966016 }
  0x35   :  { %2328 = dma.done.wait [#allocation6], 14336  }
  0x36   :  { %2329 = vsyncadd [#allocation6], 4294952960 }
  0x37   :  { %2330 = dma.done.wait [#allocation9], 3072  }
  0x38   :  { %2331 = vsyncadd [#allocation9], 4294964224  ;;  %v2012_v0 = vld [vmem:[#allocation7 + $0xac] ss:$12 sps:$4 sm:$0xff]   ;;  %v2014_v1 = vld [vmem:[#allocation7 + $0xa8] ss:$12 sps:$4 sm:$0xff]  }
  0x39   :  { %883 = vmatprep.subr.bf16.mxu0 %v2012_v0  ;;  %v2015_v2 = vld [vmem:[#allocation7 + $0x22c] ss:$12 sps:$4 sm:$0xff]   ;;  %v2017_v3 = vld [vmem:[#allocation7 + $0x228] ss:$12 sps:$4 sm:$0xff]   ;;  %v2020_v5 = vld [vmem:[#allocation7 + $0x90] ss:$12 sps:$4 sm:$0xff]  }
  0x3a   :  { %884 = vmatpush1.bf16.msra.mxu0 %v2014_v1  ;;  %v2018_v4 = vld [vmem:[#allocation7 + $0x94] ss:$12 sps:$4 sm:$0xff]   ;;  %936 = vmatprep.subr.bf16.mxu1 %v2015_v2  ;;  %v2023_v7 = vld [vmem:[#allocation7 + $0x210] ss:$12 sps:$4 sm:$0xff]   ;;  %v2026_v9 = vld [vmem:[#allocation7 + $0x78] ss:$12 sps:$4 sm:$0xff]  }
  0x3b   :  { %v2021_v6 = vld [vmem:[#allocation7 + $0x214] ss:$12 sps:$4 sm:$0xff]   ;;  %937 = vmatpush1.bf16.msra.mxu1 %v2017_v3  ;;  %885 = vmatprep.subr.bf16.mxu0 %v2018_v4  ;;  %v2024_v8 = vld [vmem:[#allocation7 + $0x7c] ss:$12 sps:$4 sm:$0xff]   ;;  %v2030_v11 = vld [vmem:[#allocation7 + $0x64] ss:$12 sps:$4 sm:$0xff]  }
  0x3c   :  { %938 = vmatprep.subr.bf16.mxu1 %v2021_v6  ;;  %v2027_v10 = vld [vmem:[#allocation7 + $0x1fc] ss:$12 sps:$4 sm:$0xff]   ;;  %v2029_v12 = vld [vmem:[#allocation7 + $0x1f8] ss:$12 sps:$4 sm:$0xff]   ;;  %v2032_v14 = vld [vmem:[#allocation7 + $0x60] ss:$12 sps:$4 sm:$0xff]  }
  0x3d   :  { %v2033_v13 = vld [vmem:[#allocation7 + $0x1e4] ss:$12 sps:$4 sm:$0xff]   ;;  %v2036_v15 = vld [vmem:[#allocation7 + $0x4c] ss:$12 sps:$4 sm:$0xff]   ;;  %v2038_v18 = vld [vmem:[#allocation7 + $0x48] ss:$12 sps:$4 sm:$0xff]  }
  0x3e   :  { %886 = vmatpush1.bf16.msra.mxu0 %v2020_v5  ;;  %v2035_v16 = vld [vmem:[#allocation7 + $0x1e0] ss:$12 sps:$4 sm:$0xff]   ;;  %v2041_v20 = vld [vmem:[#allocation7 + $0x1c8] ss:$12 sps:$4 sm:$0xff]   ;;  %v2044_v22 = vld [vmem:[#allocation7 + $0x30] ss:$12 sps:$4 sm:$0xff]  }
  0x3f   :  { %887 = vmatprep.subr.bf16.mxu0 %v2024_v8  ;;  %939 = vmatpush1.bf16.msra.mxu1 %v2023_v7  ;;  %v2039_v17 = vld [vmem:[#allocation7 + $0x1cc] ss:$12 sps:$4 sm:$0xff]   ;;  %v2042_v19 = vld [vmem:[#allocation7 + $0x34] ss:$12 sps:$4 sm:$0xff]   ;;  %v2048_v23 = vld [vmem:[#allocation7 + $0x1c] ss:$12 sps:$4 sm:$0xff]  }
  0x40   :  { %940 = vmatprep.subr.bf16.mxu1 %v2027_v10  ;;  %v2045_v21 = vld [vmem:[#allocation7 + $0x1b4] ss:$12 sps:$4 sm:$0xff]   ;;  %v2047_v24 = vld [vmem:[#allocation7 + $0x1b0] ss:$12 sps:$4 sm:$0xff]   ;;  %v2050_v26 = vld [vmem:[#allocation7 + $0x18] ss:$12 sps:$4 sm:$0xff]  }
  0x41   :  { %v2051_v25 = vld [vmem:[#allocation7 + $0x19c] ss:$12 sps:$4 sm:$0xff]   ;;  %v2054_v27 = vld [vmem:[#allocation7 + $0x4] ss:$12 sps:$4 sm:$0xff]   ;;  %v2056_v30 = vld [vmem:[#allocation7] ss:$12 sps:$4 sm:$0xff]  }
  0x42   :  { %888 = vmatpush1.bf16.msra.mxu0 %v2026_v9  ;;  %v2053_v28 = vld [vmem:[#allocation7 + $0x198] ss:$12 sps:$4 sm:$0xff]   ;;  %v2059_v32 = vld [vmem:[#allocation7 + $0x180] ss:$12 sps:$4 sm:$0xff]   ;;  %v2062_v34 = vld [vmem:[#allocation7 + $0x168] ss:$12 sps:$4 sm:$0xff]  }
  0x43   :  { %889 = vmatprep.subr.bf16.mxu0 %v2030_v11  ;;  %941 = vmatpush1.bf16.msra.mxu1 %v2029_v12  ;;  %v2057_v29 = vld [vmem:[#allocation7 + $0x184] ss:$12 sps:$4 sm:$0xff]   ;;  %v2060_v31 = vld [vmem:[#allocation7 + $0x16c] ss:$12 sps:$4 sm:$0xff]   ;;  %v2066_v35 = vld [vmem:[#allocation7 + $0x154] ss:$12 sps:$4 sm:$0xff]  }
  0x44   :  { %942 = vmatprep.subr.bf16.mxu1 %v2033_v13  ;;  %v2063_v33 = vld [vmem:[#allocation7 + $0x2ec] ss:$12 sps:$4 sm:$0xff]   ;;  %v2065_v36 = vld [vmem:[#allocation7 + $0x2e8] ss:$12 sps:$4 sm:$0xff]   ;;  %v2068_v38 = vld [vmem:[#allocation7 + $0x150] ss:$12 sps:$4 sm:$0xff]  }
  0x45   :  { %v2069_v37 = vld [vmem:[#allocation7 + $0x2d4] ss:$12 sps:$4 sm:$0xff]   ;;  %v2072_v39 = vld [vmem:[#allocation7 + $0x13c] ss:$12 sps:$4 sm:$0xff]   ;;  %v2074_v42 = vld [vmem:[#allocation7 + $0x138] ss:$12 sps:$4 sm:$0xff]  }
  0x46   :  { %890 = vmatpush1.bf16.msra.mxu0 %v2032_v14  ;;  %v2071_v40 = vld [vmem:[#allocation7 + $0x2d0] ss:$12 sps:$4 sm:$0xff]   ;;  %v2077_v44 = vld [vmem:[#allocation7 + $0x2b8] ss:$12 sps:$4 sm:$0xff]   ;;  %v2080_v46 = vld [vmem:[#allocation7 + $0x120] ss:$12 sps:$4 sm:$0xff]  }
  0x47   :  { %891 = vmatprep.subr.bf16.mxu0 %v2036_v15  ;;  %943 = vmatpush1.bf16.msra.mxu1 %v2035_v16  ;;  %v2075_v41 = vld [vmem:[#allocation7 + $0x2bc] ss:$12 sps:$4 sm:$0xff]   ;;  %v2078_v43 = vld [vmem:[#allocation7 + $0x124] ss:$12 sps:$4 sm:$0xff]   ;;  %v2084_v48 = vld [vmem:[#allocation7 + $0x10c] ss:$12 sps:$4 sm:$0xff]  }
  0x48   :  { %944 = vmatprep.subr.bf16.mxu1 %v2039_v17  ;;  %v2081_v45 = vld [vmem:[#allocation7 + $0x2a4] ss:$12 sps:$4 sm:$0xff]   ;;  %v2394_v47 = vld [vmem:[#allocation2 + $0x4] ss:$20 sps:$4 sm:$0xff]   ;;  %v2083_v49 = vld [vmem:[#allocation7 + $0x2a0] ss:$12 sps:$4 sm:$0xff]  }
  0x49   :  { %915 = vmatprep.mubr.bf16.mxu0 %v2394_v47  ;;  %v2087_v50 = vld [vmem:[#allocation7 + $0x28c] ss:$12 sps:$4 sm:$0xff]   ;;  %v2397_v51 = vld [vmem:[#allocation2 + $0xc] ss:$20 sps:$4 sm:$0xff]   ;;  %v2086_v52 = vld [vmem:[#allocation7 + $0x108] ss:$12 sps:$4 sm:$0xff]  }
  0x4a   :  { %892 = vmatpush1.bf16.msra.mxu0 %v2038_v18  ;;  %v2090_v53 = vld [vmem:[#allocation7 + $0xf4] ss:$12 sps:$4 sm:$0xff]   ;;  %968 = vmatprep.mubr.bf16.mxu1 %v2397_v51  ;;  %v2092_v56 = vld [vmem:[#allocation7 + $0xf0] ss:$12 sps:$4 sm:$0xff]   ;;  %v2098_v59 = vld [vmem:[#allocation7 + $0xd8] ss:$12 sps:$4 sm:$0xff]  }
  0x4b   :  { %893 = vmatprep.subr.bf16.mxu0 %v2042_v19  ;;  %945 = vmatpush1.bf16.msra.mxu1 %v2041_v20  ;;  %v2089_v54 = vld [vmem:[#allocation7 + $0x288] ss:$12 sps:$4 sm:$0xff]   ;;  %v2095_v57 = vld [vmem:[#allocation7 + $0x270] ss:$12 sps:$4 sm:$0xff]   ;;  %v2101_v61 = vld [vmem:[#allocation7 + $0x258] ss:$12 sps:$4 sm:$0xff]  }
  0x4c   :  { %946 = vmatprep.subr.bf16.mxu1 %v2045_v21  ;;  %v2093_v55 = vld [vmem:[#allocation7 + $0x274] ss:$12 sps:$4 sm:$0xff]   ;;  %v2096_v58 = vld [vmem:[#allocation7 + $0xdc] ss:$12 sps:$4 sm:$0xff]   ;;  %v2102_v62 = vld [vmem:[#allocation7 + $0xc4] ss:$12 sps:$4 sm:$0xff]  }
  0x4d   :  { %v2099_v60 = vld [vmem:[#allocation7 + $0x25c] ss:$12 sps:$4 sm:$0xff]   ;;  %v2104_v63 = vld [vmem:[#allocation7 + $0xc0] ss:$12 sps:$4 sm:$0xff]   ;;  %v2105_v0 = vld [vmem:[#allocation7 + $0x244] ss:$12 sps:$4 sm:$0xff]  }
  0x4e   :  { %894 = vmatpush1.bf16.msra.mxu0 %v2044_v22  ;;  %v2110_v1 = vld [vmem:[#allocation7 + $0x240] ss:$12 sps:$4 sm:$0xff]   ;;  %v2400_v2 = vld [vmem:[#allocation2] ss:$20 sps:$4 sm:$0xff]   ;;  %v2111_v4 = vld [vmem:[#allocation7 + $0x348] ss:$12 sps:$4 sm:$0xff]  }
  0x4f   :  { %895 = vmatprep.subr.bf16.mxu0 %v2048_v23  ;;  %947 = vmatpush1.bf16.msra.mxu1 %v2047_v24  ;;  %v2113_v3 = vld [vmem:[#allocation7 + $0x34c] ss:$12 sps:$4 sm:$0xff]   ;;  %v2119_v6 = vld [vmem:[#allocation7 + $0x334] ss:$12 sps:$4 sm:$0xff]   ;;  %v2134_v7 = vld [vmem:[#allocation7 + $0x170] ss:$12 sps:$4 sm:$0xff]  }
  0x50   :  { %948 = vmatprep.subr.bf16.mxu1 %v2051_v25  ;;  %v2402_v5 = vld [vmem:[#allocation2 + $0x8] ss:$20 sps:$4 sm:$0xff]   ;;  %v2404_v8 = vld [vmem:[#allocation2 + $0x2c] ss:$20 sps:$4 sm:$0xff]   ;;  %v2414_v18 = vld [vmem:[#allocation2 + $0x30] ss:$20 sps:$4 sm:$0xff]  }
  0x51   :  { %v2406_v9 = vld [vmem:[#allocation2 + $0x34] ss:$20 sps:$4 sm:$0xff]   ;;  %v2135_v10 = vld [vmem:[#allocation7 + $0xb0] ss:$12 sps:$4 sm:$0xff]   ;;  %v2138_v17 = vld [vmem:[#allocation7 + $0x140] ss:$12 sps:$4 sm:$0xff]  }
  0x52   :  { %896 = vmatpush1.bf16.msra.mxu0 %v2050_v26  ;;  %v2136_v11 = vld [vmem:[#allocation7 + $0x158] ss:$12 sps:$4 sm:$0xff]   ;;  %v2117_v12 = vld [vmem:[#allocation7 + $0x330] ss:$12 sps:$4 sm:$0xff]   ;;  %vm876_vm0 = vcmask 523264   ;;  %v2346_v24 = vmov 0  }
  0x53   :  { %897 = vmatprep.subr.bf16.mxu0 %v2054_v27  ;;  %949 = vmatpush1.bf16.msra.mxu1 %v2053_v28  ;;  %v2411_v13 = vld [vmem:[#allocation2 + $0x28] ss:$20 sps:$4 sm:$0xff]   ;;  %v2125_v14 = vld [vmem:[#allocation7 + $0x31c] ss:$12 sps:$4 sm:$0xff]   ;;  %v2131_v19 = vld [vmem:[#allocation7 + $0x304] ss:$12 sps:$4 sm:$0xff]  }
  0x54   :  { %950 = vmatprep.subr.bf16.mxu1 %v2057_v29  ;;  %v2123_v15 = vld [vmem:[#allocation7 + $0x318] ss:$12 sps:$4 sm:$0xff]   ;;  %v2139_v20 = vld [vmem:[#allocation7 + $0x80] ss:$12 sps:$4 sm:$0xff]   ;;  %v2140_v21 = vld [vmem:[#allocation7 + $0x128] ss:$12 sps:$4 sm:$0xff]  }
  0x55   :  { %v2137_v16 = vld [vmem:[#allocation7 + $0x98] ss:$12 sps:$4 sm:$0xff]   ;;  %v2129_v22 = vld [vmem:[#allocation7 + $0x300] ss:$12 sps:$4 sm:$0xff]   ;;  %v2141_v23 = vld [vmem:[#allocation7 + $0x2f0] ss:$12 sps:$4 sm:$0xff]  }
  0x56   :  { %898 = vmatpush1.bf16.msra.mxu0 %v2056_v30  ;;  %v2142_v25 = vld [vmem:[#allocation7 + $0x68] ss:$12 sps:$4 sm:$0xff]   ;;  %v2144_v27 = vld [vmem:[#allocation7 + $0x110] ss:$12 sps:$4 sm:$0xff]   ;;  %v2145_v29 = vld [vmem:[#allocation7 + $0x2d8] ss:$12 sps:$4 sm:$0xff]  }
  0x57   :  { %899 = vmatprep.subr.bf16.mxu0 %v2060_v31  ;;  %951 = vmatpush1.bf16.msra.mxu1 %v2059_v32  ;;  %v2418_v26 = vld [vmem:[#allocation2 + $0x10] ss:$20 sps:$4 sm:$0xff]   ;;  %v2143_v28 = vld [vmem:[#allocation7 + $0x230] ss:$12 sps:$4 sm:$0xff]   ;;  %v2147_v31 = vld [vmem:[#allocation7 + $0x218] ss:$12 sps:$4 sm:$0xff]  }
  0x58   :  { %952 = vmatprep.subr.bf16.mxu1 %v2063_v33  ;;  %v2146_v30 = vld [vmem:[#allocation7 + $0x50] ss:$12 sps:$4 sm:$0xff]   ;;  %v2148_v33 = vld [vmem:[#allocation7 + $0xf8] ss:$12 sps:$4 sm:$0xff]   ;;  %vm1302_vm1 = vcmask 1040384   ;;  %vm2347_vm3 = vmmov 1  }
  0x59   :  { %v2133_v32 = vld [vmem:[#allocation2 + $0x38] ss:$20 sps:$4 sm:$0xff]   ;;  %vm1315_vm5 = vcmask 1046528  }
  0x5a   :  { %900 = vmatpush2.bf16.msra.mxu0 %v2062_v34  ;;  %v2149_v34 = vld [vmem:[#allocation7 + $0x2c0] ss:$12 sps:$4 sm:$0xff]  }
  0x5b   :  { %901 = vmatprep.subr.bf16.mxu0 %v2066_v35  ;;  %953 = vmatpush2.bf16.msra.mxu1 %v2065_v36  ;;  %v2150_v35 = vld [vmem:[#allocation7 + $0x38] ss:$12 sps:$4 sm:$0xff]   ;;  %v2151_v36 = vld [vmem:[#allocation7 + $0x200] ss:$12 sps:$4 sm:$0xff]  }
  0x5c   :  { %954 = vmatprep.subr.bf16.mxu1 %v2069_v37  ;;  %v2152_v37 = vld [vmem:[#allocation7 + $0xe0] ss:$12 sps:$4 sm:$0xff]  }
  0x5e   :  { %902 = vmatpush2.bf16.msra.mxu0 %v2068_v38  ;;  %v2153_v38 = vld [vmem:[#allocation7 + $0x2a8] ss:$12 sps:$4 sm:$0xff]  }
  0x5f   :  { %903 = vmatprep.subr.bf16.mxu0 %v2072_v39  ;;  %955 = vmatpush2.bf16.msra.mxu1 %v2071_v40  ;;  %v2154_v39 = vld [vmem:[#allocation7 + $0x20] ss:$12 sps:$4 sm:$0xff]   ;;  %v2155_v40 = vld [vmem:[#allocation7 + $0x1e8] ss:$12 sps:$4 sm:$0xff]  }
  0x60   :  { %956 = vmatprep.subr.bf16.mxu1 %v2075_v41  ;;  %v2156_v41 = vld [vmem:[#allocation7 + $0xc8] ss:$12 sps:$4 sm:$0xff]  }
  0x62   :  { %904 = vmatpush2.bf16.msra.mxu0 %v2074_v42  ;;  %v2157_v42 = vld [vmem:[#allocation7 + $0x290] ss:$12 sps:$4 sm:$0xff]  }
  0x63   :  { %905 = vmatprep.subr.bf16.mxu0 %v2078_v43  ;;  %957 = vmatpush2.bf16.msra.mxu1 %v2077_v44  ;;  %v2158_v43 = vld [vmem:[#allocation7 + $0x8] ss:$12 sps:$4 sm:$0xff]   ;;  %v2159_v44 = vld [vmem:[#allocation7 + $0x1d0] ss:$12 sps:$4 sm:$0xff]  }
  0x64   :  { %958 = vmatprep.subr.bf16.mxu1 %v2081_v45  ;;  %v2160_v45 = vld [vmem:[#allocation7 + $0x278] ss:$12 sps:$4 sm:$0xff]  }
  0x66   :  { %906 = vmatpush2.bf16.msra.mxu0 %v2080_v46  ;;  %v2161_v46 = vld [vmem:[#allocation7 + $0x350] ss:$12 sps:$4 sm:$0xff]  }
  0x67   :  { %907 = vmatprep.subr.bf16.mxu0 %v2084_v48  ;;  %959 = vmatpush2.bf16.msra.mxu1 %v2083_v49  ;;  %v2163_v48 = vld [vmem:[#allocation7 + $0x260] ss:$12 sps:$4 sm:$0xff]   ;;  %v2164_v49 = vld [vmem:[#allocation7 + $0x338] ss:$12 sps:$4 sm:$0xff]  }
  0x68   :  { %960 = vmatprep.subr.bf16.mxu1 %v2087_v50  ;;  %v2165_v50 = vld [vmem:[#allocation7 + $0x1a0] ss:$12 sps:$4 sm:$0xff]  }
  0x6a   :  { %908 = vmatpush2.bf16.msra.mxu0 %v2086_v52  ;;  %v2167_v52 = vld [vmem:[#allocation7 + $0x320] ss:$12 sps:$4 sm:$0xff]  }
  0x6b   :  { %909 = vmatprep.subr.bf16.mxu0 %v2090_v53  ;;  %961 = vmatpush2.bf16.msra.mxu1 %v2089_v54  ;;  %v2168_v53 = vld [vmem:[#allocation7 + $0x188] ss:$12 sps:$4 sm:$0xff]  }
  0x6c   :  { %962 = vmatprep.subr.bf16.mxu1 %v2093_v55  ;;  %v2169_v54 = vld [vmem:[#allocation7 + $0x308] ss:$12 sps:$4 sm:$0xff]   ;;  %v2170_v55 = vld [vmem:[#allocation8 + $0x78] sm:$0xff]  }
  0x6e   :  { %910 = vmatpush2.bf16.msra.mxu0 %v2092_v56  ;;  %v2171_v56 = vld [vmem:[#allocation8 + $0x38] sm:$0xff]  }
  0x6f   :  { %911 = vmatprep.subr.bf16.mxu0 %v2096_v58  ;;  %963 = vmatpush2.bf16.msra.mxu1 %v2095_v57  ;;  %v2172_v57 = vld [vmem:[#allocation8 + $0x70] sm:$0xff]  }
  0x70   :  { %964 = vmatprep.subr.bf16.mxu1 %v2099_v60  ;;  %v2173_v58 = vld [vmem:[#allocation8 + $0x30] sm:$0xff]   ;;  %v2175_v60 = vld [vmem:[#allocation8 + $0xb8] sm:$0xff]  }
  0x72   :  { %912 = vmatpush2.bf16.msra.mxu0 %v2098_v59  ;;  %v2174_v59 = vld [vmem:[#allocation8 + $0x68] sm:$0xff]  }
  0x73   :  { %913 = vmatprep.subr.bf16.mxu0 %v2102_v62  ;;  %965 = vmatpush2.bf16.msra.mxu1 %v2101_v61  ;;  %v2176_v61 = vld [vmem:[#allocation8 + $0x28] sm:$0xff]   ;;  %v2177_v62 = vld [vmem:[#allocation8 + $0x60] sm:$0xff]  }
  0x74   :  { %966 = vmatprep.subr.bf16.mxu1 %v2105_v0  ;;  %v2179_v0 = vld [vmem:[#allocation8 + $0x20] sm:$0xff]  }
  0x76   :  { %914 = vmatpush2.bf16.msra.mxu0 %v2104_v63  ;;  %v2178_v63 = vld [vmem:[#allocation8 + $0xb0] sm:$0xff]  }
  0x77   :  { %997 = vmatprep.subr.bf16.mxu0 %v2113_v3  ;;  %967 = vmatpush2.bf16.msra.mxu1 %v2110_v1  ;;  %v2180_v1 = vld [vmem:[#allocation8 + $0x58] sm:$0xff]  }
  0x78   :  { %1865 = vmatprep.subr.bf16.mxu1 %v2134_v7  ;;  %v2182_v3 = vld [vmem:[#allocation8 + $0x18] sm:$0xff]   ;;  %v2186_v7 = vld [vmem:[#allocation8 + $0x48] sm:$0xff]  }
  0x79   :  { %916 = vmatmul.mubr.bf16.vlgmr.msra.gmra.mxu0 %v2400_v2 }
  0x7a   :  { %998 = vmatpush1.bf16.msra.mxu0 %v2111_v4  ;;  %925 = vmatprep.mubr.bf16.mxu0 %v2404_v8  ;;  %v2183_v4 = vld [vmem:[#allocation8 + $0x50] sm:$0xff]  }
  0x7b   :  { %969 = vmatmul.mubr.bf16.vlgmr.msra.gmra.mxu1 %v2402_v5  ;;  %999 = vmatprep.subr.bf16.mxu0 %v2119_v6  ;;  %v2185_v6 = vld [vmem:[#allocation8 + $0x10] sm:$0xff]  }
  0x7c   :  { %978 = vmatprep.mubr.bf16.mxu1 %v2406_v9  ;;  %1866 = vmatpush3.bf16.msra.mxu1 %v2135_v10  ;;  %v2189_v10 = vld [vmem:[#allocation8 + $0x40] sm:$0xff]  }
  0x7d   :  { %1867 = vmatprep.subr.bf16.mxu1 %v2136_v11  ;;  %v2190_v11 = vld [vmem:[#allocation8 + $0x90] sm:$0xff]  }
  0x7e   :  { %1000 = vmatpush1.bf16.msra.mxu0 %v2117_v12  ;;  %v2191_v12 = vld [vmem:[#allocation8] sm:$0xff]  }
  0x7f   :  { %1001 = vmatprep.subr.bf16.mxu0 %v2125_v14  ;;  %v2193_v14 = vld [vmem:[#allocation8 + $0x80] sm:$0xff]  }
  0x80   :  { %1868 = vmatpush3.bf16.msra.mxu1 %v2137_v16 }
  0x81   :  { %926 = vmatmul.mubr.bf16.gmra.mxu0 %v2411_v13  ;;  %1869 = vmatprep.subr.bf16.mxu1 %v2138_v17 }
  0x82   :  { %1002 = vmatpush1.bf16.msra.mxu0 %v2123_v15  ;;  %1021 = vmatprep.mubr.bf16.mxu0 %v2346_v24  ;;  %v235_v15 = vlaneseq }
  0x83   :  { %979 = vmatmul.mubr.bf16.gmra.mxu1 %v2414_v18  ;;  %1003 = vmatprep.subr.bf16.mxu0 %v2131_v19 }
  0x84   :  { %1870 = vmatpush3.bf16.msra.mxu1 %v2139_v20  ;;  %1074 = vmatprep.mubr.bf16.mxu1 %v2394_v47  ;;  %v2162_v47 = vld [vmem:[#allocation7 + $0x1b8] ss:$12 sps:$4 sm:$0xff]   ;;  %v2434_v16 = vshrl.u32 %v235_v15, 7 }
  0x85   :  { %1871 = vmatprep.subr.bf16.mxu1 %v2140_v21 }
  0x86   :  { %1004 = vmatpush1.bf16.msra.mxu0 %v2129_v22  ;;  %v237_v17 = vsub.s32 0, %v2434_v16 }
  0x87   :  { %1893 = vmatprep.subr.bf16.mxu0 %v2141_v23 }
  0x88   :  { %1872 = vmatpush3.bf16.msra.mxu1 %v2142_v25 }
  0x89   :  { %1809 = vmatmul.mubr.msk.bf16.vlgmr.msra.gmra.mxu0 %vm876_vm0, %v2418_v26  ;;  %1873 = vmatprep.subr.bf16.mxu1 %v2144_v27  ;;  %v241_v27 = vsub.s32 1, %v2434_v16 }
  0x8a   :  { %1031 = vmatprep.mubr.bf16.mxu0 %v2346_v24  ;;  %1894 = vmatpush3.bf16.msra.mxu0 %v2143_v28 }
  0x8b   :  { %1895 = vmatprep.subr.bf16.mxu0 %v2145_v29 }
  0x8c   :  { %1874 = vmatpush3.bf16.msra.mxu1 %v2146_v30 }
  0x8d   :  { %1875 = vmatprep.subr.bf16.mxu1 %v2148_v33 }
  0x8e   :  { %1896 = vmatpush3.bf16.msra.mxu0 %v2147_v31 }
  0x8f   :  { %1897 = vmatprep.subr.bf16.mxu0 %v2149_v34 }
  0x90   :  { %1876 = vmatpush3.bf16.msra.mxu1 %v2150_v35 }
  0x91   :  { %1810 = vmatmul.mubr.msk.bf16.gmra.mxu0 %vm876_vm0, %v2133_v32  ;;  %1877 = vmatprep.subr.bf16.mxu1 %v2152_v37 }
  0x92   :  { %1123 = vmatprep.mubr.bf16.mxu0 %v2397_v51  ;;  %1898 = vmatpush3.bf16.msra.mxu0 %v2151_v36  ;;  %v2166_v51 = vld [vmem:[#allocation7 + $0x248] ss:$12 sps:$4 sm:$0xff]  }
  0x93   :  { %1899 = vmatprep.subr.bf16.mxu0 %v2153_v38 }
  0x94   :  { %1878 = vmatpush3.bf16.msra.mxu1 %v2154_v39 }
  0x95   :  { %1879 = vmatprep.subr.bf16.mxu1 %v2156_v41 }
  0x96   :  { %1900 = vmatpush3.bf16.msra.mxu0 %v2155_v40 }
  0x97   :  { %1901 = vmatprep.subr.bf16.mxu0 %v2157_v42 }
  0x98   :  { %1880 = vmatpush3.bf16.msra.mxu1 %v2158_v43 }
  0x99   :  { %1965 = vmatprep.subr.bf16.mxu1 %v2161_v46 }
  0x9a   :  { %1902 = vmatpush3.bf16.msra.mxu0 %v2159_v44 }
  0x9b   :  { %1075 = vmatmul.mubr.bf16.vlgmr.msra.gmra.mxu1 %v2400_v2  ;;  %1903 = vmatprep.subr.bf16.mxu0 %v2160_v45  ;;  %v2181_v2 = vld [vmem:[#allocation8 + $0xa8] sm:$0xff]  }
  0x9c   :  { %1966 = vmatpush3.bf16.msra.mxu1 %v2161_v46  ;;  %1082 = vmatprep.mubr.bf16.mxu1 %v2404_v8  ;;  %v2187_v8 = vld [vmem:[#allocation8 + $0x98] sm:$0xff]  }
  0x9d   :  { %1967 = vmatprep.subr.bf16.mxu1 %v2164_v49 }
  0x9e   :  { %1904 = vmatpush3.bf16.msra.mxu0 %v2162_v47 }
  0x9f   :  { %1905 = vmatprep.subr.bf16.mxu0 %v2163_v48 }
  0xa0   :  { %1968 = vmatpush3.bf16.msra.mxu1 %v2164_v49 }
  0xa1   :  { %1969 = vmatprep.subr.bf16.mxu1 %v2167_v52 }
  0xa2   :  { %1906 = vmatpush3.bf16.msra.mxu0 %v2165_v50 }
  0xa3   :  { %1083 = vmatmul.mubr.bf16.gmra.mxu1 %v2411_v13  ;;  %1907 = vmatprep.subr.bf16.mxu0 %v2166_v51  ;;  %v2192_v13 = vld [vmem:[#allocation8 + $0x88] sm:$0xff]  }
  0xa4   :  { %1970 = vmatpush3.bf16.msra.mxu1 %v2167_v52  ;;  %1973 = vmatprep.mubr.msk.bf16.mxu1 %vm876_vm0, %v2418_v26 }
  0xa5   :  { %1971 = vmatprep.subr.bf16.mxu1 %v2169_v54 }
  0xa6   :  { %1908 = vmatpush3.bf16.msra.mxu0 %v2168_v53 }
  0xa7   :  { %1927 = vmatprep.subr.bf16.mxu0 %v2170_v55 }
  0xa8   :  { %1972 = vmatpush3.bf16.msra.mxu1 %v2169_v54 }
  0xa9   :  { %1124 = vmatmul.mubr.bf16.vlgmr.msra.gmra.mxu0 %v2402_v5  ;;  %1977 = vmatprep.subr.bf16.mxu1 %v2175_v60  ;;  %v2184_v5 = vld [vmem:[#allocation8 + $0xa0] sm:$0xff]  }
  0xaa   :  { %1131 = vmatprep.mubr.bf16.mxu0 %v2406_v9  ;;  %1928 = vmatpush3.bf16.msra.mxu0 %v2171_v56  ;;  %v2188_v9 = vld [vmem:[#allocation8 + $0x8] sm:$0xff]  }
  0xab   :  { %1974 = vmatmul.mubr.msk.bf16.vlgmr.msra.gmra.mxu1 %vm876_vm0, %v2133_v32  ;;  %1929 = vmatprep.subr.bf16.mxu0 %v2172_v57 }
  0xac   :  { %1978 = vmatpush3.bf16.msra.mxu1 %v2175_v60 }
  0xad   :  { %1979 = vmatprep.subr.bf16.mxu1 %v2178_v63 }
  0xae   :  { %1930 = vmatpush3.bf16.msra.mxu0 %v2173_v58 }
  0xaf   :  { %1931 = vmatprep.subr.bf16.mxu0 %v2174_v59 }
  0xb0   :  { %1980 = vmatpush3.bf16.msra.mxu1 %v2178_v63 }
  0xb1   :  { %1132 = vmatmul.mubr.bf16.gmra.mxu0 %v2414_v18  ;;  %1981 = vmatprep.subr.bf16.mxu1 %v2181_v2  ;;  %v2440_v18 = vld [vmem:[%s2500_s3] sm:$0x7]  ;;  %s2348_s3 = smov [#allocation10]  }
  0xb2   :  { %1932 = vmatpush3.bf16.msra.mxu0 %v2176_v61  ;;  %v238_v19 = vrot.slane %v2440_v18, %v237_v17  ;;  %v242_v34 = vrot.slane %v2440_v18, %v241_v27  ;;  %v1248_v27 = vadd.s32 16, %v2434_v16  ;;  %s1677_s19 = sshll.u32 %s2348_s3, 4  ;;  %s1678_s19 = int_to_ptr.vmem [resolvable:$true] %s1677_s19 }
  0xb3   :  { %1933 = vmatprep.subr.bf16.mxu0 %v2177_v62  ;;  %s2306_s20 = scalar_lea.vmem %s1678_s19, 512  ;;  %p2311_p7 = scmp.lt.s32.totalorder %s1678_s19, %s1678_s19 }
  0xb4   :  { %1982 = vmatpush3.bf16.msra.mxu1 %v2181_v2  ;;  %p2307_p6 = scmp.ne.s32.totalorder %s1678_s19, %s2306_s20  ;;  %p2312_p8 = scmp.lt.s32.totalorder %s2306_s20, %s2306_s20 }
  0xb5   :  { %1983 = vmatprep.subr.bf16.mxu1 %v2184_v5 }
  0xb6   :  { %1934 = vmatpush3.bf16.msra.mxu0 %v2179_v0  ;;  %p2313_p9 = por %p2312_p8, %p2311_p7 }
  0xb7   :  { %1935 = vmatprep.subr.bf16.mxu0 %v2180_v1 }
  0xb8   :  { %1984 = vmatpush3.bf16.msra.mxu1 %v2184_v5  ;;  %p2314_p10 = pnand %p2313_p9, %p2307_p6 }
  0xb9   :  { %1985 = vmatprep.subr.bf16.mxu1 %v2187_v8 }
  0xba   :  { %1936 = vmatpush3.bf16.msra.mxu0 %v2182_v3 }
  0xbb   :  { %1937 = vmatprep.subr.bf16.mxu0 %v2183_v4 }
  0xbc   :  { %1986 = vmatpush3.bf16.msra.mxu1 %v2187_v8 }
  0xbd   :  { %1987 = vmatprep.subr.bf16.mxu1 %v2190_v11 }
  0xbe   :  { %1938 = vmatpush3.bf16.msra.mxu0 %v2185_v6 }
  0xbf   :  { %1939 = vmatprep.subr.bf16.mxu0 %v2186_v7 }
  0xc0   :  { %1988 = vmatpush3.bf16.msra.mxu1 %v2190_v11 }
  0xc1   :  { %1989 = vmatprep.subr.bf16.mxu1 %v2192_v13 }
  0xc2   :  { %1940 = vmatpush3.bf16.msra.mxu0 %v2188_v9 }
  0xc3   :  { %1941 = vmatprep.subr.bf16.mxu0 %v2189_v10 }
  0xc4   :  { %1990 = vmatpush3.bf16.msra.mxu1 %v2192_v13 }
  0xc5   :  { %1991 = vmatprep.subr.bf16.mxu1 %v2193_v14 }
  0xc6   :  { %1942 = vmatpush3.bf16.msra.mxu0 %v2191_v12 }
  0xc8   :  { %1992 = vmatpush3.bf16.msra.mxu1 %v2193_v14 }
 0x139   :  { %v917_v20 = vpop.f32.mrf.mxu0 }
 0x13a   :  { %v918_v21 = vadd.f32 %v917_v20, %v238_v19  ;;  %v2453_v20 = vld [vmem:[#allocation5] sm:$0xff] }
 0x13b   :  { %v919_v22 = vpop.f32.mrf.mxu0  ;;  %v970_v23 = vpop.f32.mrf.mxu1 }
 0x13c   :  { %v971_v24 = vadd.f32 %v970_v23, %v918_v21  ;;  %v920_v41 = vadd.f32 %v919_v22, %v242_v34  ;;  %v2456_v23 = vld [vmem:[#allocation5 + $0x8] sm:$0xff] }
 0x13d   :  { %v921_v25 = vpop.f32.mrf.mxu0  ;;  %v972_v26 = vpop.f32.mrf.mxu1 }
 0x13e   :  { %v922_v28 = vadd.f32 %v921_v25, %v238_v19  ;;  %v973_v47 = vadd.f32 %v972_v26, %v920_v41  ;;  %v1247_v25 = vadd.s32 8, %v2434_v16 }
 0x13f   :  { %v923_v29 = vpop.f32.mrf.mxu0  ;;  %v974_v30 = vpop.f32.mrf.mxu1 }
 0x140   :  { %v975_v31 = vadd.f32 %v974_v30, %v922_v28  ;;  %v924_v48 = vadd.f32 %v923_v29, %v242_v34  ;;  %v2462_v30 = vld [vmem:[#allocation5 + $0x10] sm:$0xff] }
 0x141   :  { %v927_v32 = vpop.f32.mrf.mxu0  ;;  %v976_v33 = vpop.f32.mrf.mxu1 }
 0x142   :  { %v928_v35 = vadd.f32 %v927_v32, %v238_v19  ;;  %v977_v53 = vadd.f32 %v976_v33, %v924_v48  ;;  %v1249_v32 = vadd.s32 24, %v2434_v16 }
 0x143   :  { %v929_v36 = vpop.f32.mrf.mxu0  ;;  %v980_v37 = vpop.f32.mrf.mxu1 }
 0x144   :  { %v981_v38 = vadd.f32 %v980_v37, %v928_v35  ;;  %v930_v54 = vadd.f32 %v929_v36, %v242_v34  ;;  %v1268_v36 = vand.u32 15, %v1248_v27 }
 0x145   :  { %v931_v39 = vpop.f32.mrf.mxu0  ;;  %v982_v40 = vpop.f32.mrf.mxu1 }
 0x146   :  { %v932_v42 = vadd.f32 %v931_v39, %v238_v19  ;;  %v983_v60 = vadd.f32 %v982_v40, %v930_v54  ;;  %vm1862_vm7 = vcmp.ne.s32.totalorder %v1268_v36, 0 }
 0x147   :  { %v933_v43 = vpop.f32.mrf.mxu0  ;;  %v984_v44 = vpop.f32.mrf.mxu1  ;;  %vm1850_vm10 = vmpackc.low %vm2347_vm3, %vm1862_vm7 }
 0x148   :  { %v985_v45 = vadd.f32 %v984_v44, %v932_v42  ;;  %v934_v61 = vadd.f32 %v933_v43, %v242_v34  ;;  %v2469_v42 = vld [vmem:[#allocation5 + $0x18] sm:$0xff]  ;;  %v1275_v43 = vand.u32 15, %v1249_v32 }
 0x149   :  { %v1023_v46 = vpop.f32.mrf.mxu0  ;;  %v986_v0 = vpop.f32.mrf.mxu1 }
 0x14a   :  { %v2445_v49 = vadd.f32 %v1023_v46, %v971_v24  ;;  %v987_v4 = vadd.f32 %v986_v0, %v934_v61  ;;  %v1254_v24 = vand.u32 15, %v2434_v16  ;;  %vm1864_vm9 = vcmp.ne.s32.totalorder %v1275_v43, 15 }
 0x14b   :  { %v1025_v50 = vpop.f32.mrf.mxu0  ;;  %vm1858_vm11 = vmpackc.low %vm1864_vm9, %vm2347_vm3 }
 0x14c   :  { %v1026_v51 = vadd.f32 %v1025_v50, %v973_v47  ;;  %vm1861_vm2 = vcmp.ne.s32.totalorder %v1254_v24, 0 }
 0x14d   :  { %v1027_v52 = vpop.f32.mrf.mxu0  ;;  %vm1846_vm4 = vmpackc.low %vm2347_vm3, %vm1861_vm2 }
 0x14e   :  { %v1817_v55 = vmul.f32 -1.442695, %v1026_v51  ;;  %v2447_v56 = vadd.f32 %v1027_v52, %v975_v31  ;;  %v1261_v31 = vand.u32 15, %v1247_v25 }
 0x14f   :  { %v1029_v57 = vpop.f32.mrf.mxu0 }
 0x150   :  { %2194 = vpow2.f32 %v1817_v55  ;;  %v1030_v58 = vadd.f32 %v1029_v57, %v977_v53  ;;  %vm1863_vm6 = vcmp.ne.s32.totalorder %v1261_v31, 15 }
 0x151   :  { %v1033_v59 = vpop.f32.mrf.mxu0  ;;  %vm1854_vm8 = vmpackc.low %vm1863_vm6, %vm2347_vm3 }
 0x152   :  { %v1818_v62 = vmul.f32 -1.442695, %v1030_v58  ;;  %v2449_v63 = vadd.f32 %v1033_v59, %v981_v38 }
 0x153   :  { %v1035_v1 = vpop.f32.mrf.mxu0 }
 0x154   :  { %2196 = vpow2.f32 %v1818_v62  ;;  %v1036_v2 = vadd.f32 %v1035_v1, %v983_v60 }
 0x155   :  { %v1037_v3 = vpop.f32.mrf.mxu0 }
 0x156   :  { %v1819_v5 = vmul.f32 -1.442695, %v1036_v2  ;;  %v2451_v6 = vadd.f32 %v1037_v3, %v985_v45 }
 0x157   :  { %v1039_v7 = vpop.f32.mrf.mxu0 }
 0x158   :  { %2198 = vpow2.f32 %v1819_v5  ;;  %v1040_v8 = vadd.f32 %v1039_v7, %v987_v4 }
 0x15a   :  { %v1820_v9 = vmul.f32 -1.442695, %v1040_v8 }
 0x15b   :  { %v1881_v0 = vpop.f32.mrf.mxu1 }
 0x15c   :  { %2200 = vpow2.f32 %v1820_v9  ;;  %v1813_v9 = vmul.f32 -1.442695, %v2445_v49  ;;  %v245_v49 = vsub.s32 2, %v2434_v16 }
 0x15d   :  { %v2195_v10 = vpop.eup %2194  ;;  %v1882_v1 = vpop.f32.mrf.mxu1 }
 0x15e   :  { %v1225_v11 = vadd.f32 1.0, %v2195_v10 }
 0x15f   :  { %v1884_v2 = vpop.f32.mrf.mxu1 }
 0x160   :  { %2202 = vrcp.f32 %v1225_v11 }
 0x161   :  { %v2197_v12 = vpop.eup %2196  ;;  %v1885_v4 = vpop.f32.mrf.mxu1 }
 0x162   :  { %v1226_v13 = vadd.f32 1.0, %v2197_v12  ;;  %v1815_v12 = vmul.f32 -1.442695, %v2449_v63  ;;  %v246_v63 = vrot.slane %v2440_v18, %v245_v49 }
 0x163   :  { %v1887_v7 = vpop.f32.mrf.mxu1 }
 0x164   :  { %2204 = vrcp.f32 %v1226_v13  ;;  %v1814_v13 = vmul.f32 -1.442695, %v2447_v56 }
 0x165   :  { %v2199_v14 = vpop.eup %2198  ;;  %v1888_v10 = vpop.f32.mrf.mxu1 }
 0x166   :  { %v1227_v15 = vadd.f32 1.0, %v2199_v14  ;;  %v1889_v31 = vadd.f32 %v1888_v10, %v1887_v7 }
 0x167   :  { %v1890_v14 = vpop.f32.mrf.mxu1 }
 0x168   :  { %2206 = vrcp.f32 %v1227_v15 }
 0x169   :  { %v2201_v17 = vpop.eup %2200  ;;  %v1909_v3 = vpop.f32.mrf.mxu0 }
 0x16a   :  { %v1228_v19 = vadd.f32 1.0, %v2201_v17  ;;  %v1816_v17 = vmul.f32 -1.442695, %v2451_v6 }
 0x16b   :  { %v1910_v5 = vpop.f32.mrf.mxu0 }
 0x16c   :  { %2208 = vrcp.f32 %v1228_v19  ;;  %v1891_v19 = vpop.f32.mrf.mxu1 }
 0x16d   :  { %v2203_v21 = vpop.eup %2202  ;;  %v1912_v8 = vpop.f32.mrf.mxu0  ;;  %2210 = vpow2.f32 %v1813_v9 }
 0x16e   :  { %v1241_v22 = vmul.f32 %v2203_v21, %v2453_v20  ;;  %2212 = vpow2.f32 %v1815_v12 }
 0x16f   :  { %v1913_v11 = vpop.f32.mrf.mxu0  ;;  %2214 = vpow2.f32 %v1814_v13 }
 0x170   :  { %v1303_v29 = vrot.slane %v1241_v22, 7  ;;  %v1316_v44 = vrot.slane %v1241_v22, 1  ;;  %2216 = vpow2.f32 %v1816_v17 }
 0x171   :  { %v2205_v26 = vpop.eup %2204  ;;  %v1915_v15 = vpop.f32.mrf.mxu0 }
 0x172   :  { %v1242_v28 = vmul.f32 %v2205_v26, %v2456_v23  ;;  %v1314_v38 = vsel %vm1302_vm1, 0.0, %v1303_v29 }
 0x173   :  { %v1916_v21 = vpop.f32.mrf.mxu0 }
 0x174   :  { %v1304_v33 = vrot.slane %v1242_v28, 7  ;;  %v1345_v34 = vpack.c.bf16 %v1242_v28, %v1241_v22  ;;  %v1317_v40 = vrot.slane %v1242_v28, 1  ;;  %v1975_v22 = vpop.f32.mrf.mxu1  ;;  %v1883_v28 = vadd.f32 %v1882_v1, %v1881_v0 }
 0x175   :  { %v2207_v35 = vpop.eup %2206  ;;  %v1918_v24 = vpop.f32.mrf.mxu0  ;;  %v1917_v43 = vadd.f32 %v1916_v21, %v1915_v15 }
 0x176   :  { %v1305_v37 = vsel %vm1302_vm1, %v1303_v29, %v1304_v33  ;;  %1574 = vmatprep.mubr.bf16.mxu0 %v1345_v34  ;;  %v1243_v39 = vmul.f32 %v2207_v35, %v2462_v30  ;;  %v1318_v47 = vsel %vm1315_vm5, %v1316_v44, %v1317_v40  ;;  %v1174_v25 = vpop.f32.mrf.mxu1  ;;  %v1077_v36 = vadd.f32 %v1883_v28, %v246_v63 }
 0x177   :  { %v1847_v41 = vpack.c.bf16 %v1305_v37, %v1314_v38  ;;  %v1919_v26 = vpop.f32.mrf.mxu0  ;;  %v1911_v37 = vadd.f32 %v1910_v5, %v1909_v3 }
 0x178   :  { %v1319_v45 = vrot.slane %v1243_v39, 1  ;;  %v1306_v51 = vrot.slane %v1243_v39, 7 }
 0x179   :  { %v2209_v46 = vpop.eup %2208  ;;  %1848 = vmatmul.mubr.msk.bf16.vlgmr.msra.gmra.mxu0 %vm1846_vm4, %v1847_v41  ;;  %v1085_v41 = vadd.f32 %v1889_v31, %v246_v63 }
 0x17a   :  { %v1320_v48 = vsel %vm1315_vm5, %v1317_v40, %v1319_v45  ;;  %v1244_v50 = vmul.f32 %v2209_v46, %v2469_v42  ;;  %v1307_v57 = vsel %vm1302_vm1, %v1304_v33, %v1306_v51  ;;  %v2211_v27 = vpop.eup %2210  ;;  %v1976_v33 = vpop.f32.mrf.mxu1  ;;  %v1892_v40 = vadd.f32 %v1891_v19, %v1890_v14 }
 0x17b   :  { %v1855_v52 = vpack.c.bf16 %v1320_v48, %v1318_v47  ;;  %v2213_v56 = vpop.eup %2212  ;;  %v1201_v32 = vadd.f32 1.0, %v2211_v27  ;;  %v1126_v47 = vadd.f32 %v1911_v37, %v1077_v36 }
 0x17c   :  { %v1321_v53 = vrot.slane %v1244_v50, 1  ;;  %v1348_v54 = vpack.c.bf16 %v1244_v50, %v1243_v39  ;;  %v1308_v55 = vrot.slane %v1244_v50, 7  ;;  %v2215_v34 = vpop.eup %2214  ;;  %v1203_v35 = vadd.f32 1.0, %v2213_v56  ;;  %v1177_v44 = vpop.f32.mrf.mxu1 }
 0x17d   :  { %1993 = vmatprep.mubr.msk.bf16.mxu1 %vm1854_vm8, %v1855_v52  ;;  %v2217_v38 = vpop.eup %2216  ;;  %v1886_v39 = vadd.f32 %v1885_v4, %v1884_v2  ;;  %2218 = vrcp.f32 %v1201_v32  ;;  %v1088_v50 = vadd.f32 %v1892_v40, %v246_v63  ;;  %v1920_v52 = vadd.f32 %v1919_v26, %v1918_v24 }
 0x17e   :  { %1582 = vmatprep.mubr.bf16.mxu0 %v1348_v54  ;;  %v1309_v58 = vsel %vm1302_vm1, %v1306_v51, %v1308_v55  ;;  %v1322_v59 = vsel %vm1315_vm5, %v1319_v45, %v1321_v53  ;;  %v1327_v60 = vsel %vm1315_vm5, %v1321_v53, 0.0  ;;  %v1202_v45 = vadd.f32 1.0, %v2215_v34 }
 0x17f   :  { %v1851_v61 = vpack.c.bf16 %v1309_v58, %v1307_v57  ;;  %v1859_v62 = vpack.c.bf16 %v1327_v60, %v1322_v59  ;;  %2220 = vrcp.f32 %v1203_v35  ;;  %v1204_v46 = vadd.f32 1.0, %v2217_v38 }
 0x180   :  { %v1080_v48 = vadd.f32 %v1886_v39, %v246_v63  ;;  %v1914_v51 = vadd.f32 %v1913_v11, %v1912_v8  ;;  %v1134_v55 = vadd.f32 %v1917_v43, %v1085_v41  ;;  %2222 = vrcp.f32 %v1202_v45 }
 0x181   :  { %1852 = vmatmul.mubr.msk.bf16.gmra.mxu0 %vm1850_vm10, %v1851_v61  ;;  %1994 = vmatmul.mubr.msk.bf16.vlgmr.msra.gmra.mxu1 %vm1858_vm11, %v1859_v62  ;;  %v1175_v60 = vadd.f32 %v1174_v25, %v1126_v47  ;;  %2224 = vrcp.f32 %v1204_v46  ;;  %v1137_v1 = vadd.f32 %v1920_v52, %v1088_v50 }
 0x182   :  { %v1129_v0 = vadd.f32 %v1914_v51, %v1080_v48  ;;  %v1183_v4 = vadd.f32 %v1975_v22, %v1134_v55 }
 0x183   :  { %v1186_v15 = vadd.f32 %v1976_v33, %v1137_v1 }
 0x184   :  { %v1178_v14 = vadd.f32 %v1177_v44, %v1129_v0 }
 0x18a   :  { %v2219_v22 = vpop.eup %2218 }
 0x18c   :  { %v2221_v63 = vpop.eup %2220 }
 0x18d   :  { %v2223_v36 = vpop.eup %2222 }
 0x18e   :  { %v2225_v38 = vpop.eup %2224 }
 0x239   :  { %v1943_v29 = vpop.f32.mrf.mxu0 }
 0x23b   :  { %v1944_v6 = vpop.f32.mrf.mxu0 }
 0x23c   :  { %v1945_v57 = vadd.f32 %v1944_v6, %v1943_v29 }
 0x23d   :  { %v1946_v16 = vpop.f32.mrf.mxu0 }
 0x23f   :  { %v1947_v18 = vpop.f32.mrf.mxu0 }
 0x240   :  { %v1948_v8 = vadd.f32 %v1947_v18, %v1946_v16 }
 0x241   :  { %v1949_v53 = vpop.f32.mrf.mxu0  ;;  %v1995_v54 = vpop.f32.mrf.mxu1 }
 0x243   :  { %v1950_v58 = vpop.f32.mrf.mxu0  ;;  %v1625_v59 = vpop.f32.mrf.mxu1 }
 0x244   :  { %v1951_v61 = vadd.f32 %v1950_v58, %v1949_v53  ;;  %v1626_v62 = vadd.f32 %v1945_v57, %v1625_v59 }
 0x245   :  { %v1952_v2 = vpop.f32.mrf.mxu0  ;;  %v1996_v3 = vpop.f32.mrf.mxu1 }
 0x246   :  { %v1634_v5 = vadd.f32 %v1995_v54, %v1951_v61  ;;  %v1640_v7 = vadd.f32 %v1626_v62, %v1175_v60 }
 0x247   :  { %v1953_v9 = vpop.f32.mrf.mxu0  ;;  %v1628_v10 = vpop.f32.mrf.mxu1 }
 0x248   :  { %v1642_v11 = vadd.f32 %v1634_v5, %v1183_v4  ;;  %vm1644_vm12 = vcmp.ge.f32.partialorder %v1640_v7, 0.0  ;;  %v1648_v12 = vmul.f32 0.2, %v1640_v7  ;;  %v1954_v13 = vadd.f32 %v1953_v9, %v1952_v2 }
 0x249   :  { %v1629_v17 = vadd.f32 %v1948_v8, %v1628_v10 }
 0x24a   :  { %vm1646_vm13 = vcmp.ge.f32.partialorder %v1642_v11, 0.0  ;;  %v1650_v19 = vmul.f32 0.2, %v1642_v11  ;;  %v1652_v21 = vsel %vm1644_vm12, %v1640_v7, %v1648_v12  ;;  %v1637_v24 = vadd.f32 %v1996_v3, %v1954_v13 }
 0x24b   :  { %v1656_v49 = vsub.f32 %v2453_v20, %v1652_v21  ;;  %v1641_v25 = vadd.f32 %v1629_v17, %v1178_v14 }
 0x24c   :  { %v1654_v26 = vsel %vm1646_vm13, %v1642_v11, %v1650_v19  ;;  %v1643_v27 = vadd.f32 %v1637_v24, %v1186_v15 }
 0x24d   :  { %v1658_v28 = vsub.f32 %v2462_v30, %v1654_v26  ;;  %v1660_v56 = vmul.f32 %v2219_v22, %v1656_v49  ;;  %vm1645_vm14 = vcmp.ge.f32.partialorder %v1641_v25, 0.0  ;;  %v1649_v29 = vmul.f32 0.2, %v1641_v25 }
 0x24e   :  { %vm1647_vm15 = vcmp.ge.f32.partialorder %v1643_v27, 0.0  ;;  %v1651_v31 = vmul.f32 0.2, %v1643_v27 }
 0x24f   :  { %v1662_v32 = vmul.f32 %v2221_v63, %v1658_v28  ;;  %v1664_v33 = vadd.f32 %v1660_v56, %v1652_v21  ;;  %v1653_v6 = vsel %vm1645_vm14, %v1641_v25, %v1649_v29 }
 0x250   :  { %v1655_v34 = vsel %vm1647_vm15, %v1643_v27, %v1651_v31  ;;  %v1657_v35 = vsub.f32 %v2456_v23, %v1653_v6 }
 0x251   :  { %v1666_v20 = vadd.f32 %v1662_v32, %v1654_v26  ;;  %1668 = vst [vmem:[#allocation10] sm:$0xff] %v1664_v33  ;;  %v1659_v37 = vsub.f32 %v2469_v42, %v1655_v34 }
 0x252   :  { %v1661_v39 = vmul.f32 %v2223_v36, %v1657_v35 }
 0x253   :  { %1670 = vst [vmem:[#allocation10 + $0x10] sm:$0xff] %v1666_v20  ;;  %v1663_v30 = vmul.f32 %v2225_v38, %v1659_v37 }
 0x254   :  { %v1665_v40 = vadd.f32 %v1661_v39, %v1653_v6 }
 0x255   :  { %v1667_v16 = vadd.f32 %v1663_v30, %v1655_v34 }
 0x256   :  { %1669 = vst [vmem:[#allocation10 + $0x8] sm:$0xff] %v1665_v40 }
 0x257   :  { %1671 = vst [vmem:[#allocation10 + $0x18] sm:$0xff] %v1667_v16 }
 0x258   :  { %2317 = shalt.err (!%p2314_p10)
}
 0x259   :  { %1683 = dma.vmem_to_hbm [thread:$0]  %s1678_s19, 512, %s2502_s5, [#allocation4], %s2335_s21, %s2335_s21, %s2336_s22  }
 0x25a   :  { %2332 = dma.done.wait [#allocation4], 512  }
 0x25b   :  { %2333 = vsyncadd [#allocation4], 4294966784 }
 0x25c   :  { %1687 = vsyncpa [#allocation3], 1 }
 0x25d   :  { %1688 = vsyncpa [#allocation6], 1 }
 0x25e   :  { %1689 = vsyncpa [#allocation9], 1 }
 0x25f   :  { %1690 = vsyncpa [#allocation4], 1 }

</bundles_post_ra>
